<compile_context>
chip_gen: v7x
topology: tpu7x:2x2x1
jax: 0.10.0
libtpu: 0.0.40
codegen_flags: <defaults>
</compile_context>

<pallas_src>
import functools

import jax
import jax.numpy as jnp
import numpy as np
from jax.experimental import pallas as pl
from jax.experimental.pallas import tpu as pltpu

FILTER_SIZE = 3
BN_EPS = 1e-5


def _round_up(v, m):
    return ((v + m - 1) // m) * m


def _vmem_cap_bytes():
    """Physical VMEM per TensorCore (64 MiB on v7x, 128 MiB on v5e/v6e)."""
    try:
        cap = getattr(pltpu.get_tpu_info(), "vmem_capacity_bytes", None)
        if cap:
            return int(cap)
    except Exception:  # fall back to the most restrictive generation (v7x)
        pass
    return 64 * 1024 * 1024


def _conv_row(x_ref, w_ref):
    """'same' Conv1d of one sample row via shift-after-matmul.

    x_ref : (1, C_in, Lp)    left-halo'd, zero-padded row (Lp % 128 == 0)
    w_ref : (K, C_out, C_in) per-tap weights
    Returns a (C_out, Lp) f32 value; columns [0, L) hold the conv output, the
    remaining columns are discard-region garbage (the XLU-roll wraparound and
    the right zero-padding land there by construction).
    """
    x = x_ref[0]                                   # (C_in, Lp)
    K = w_ref.shape[0]
    Lp = x.shape[-1]
    # One small MXU push per tap; the +k column shift happens AFTER the matmul
    # on the (nearly free) XLU roll slot -- no unaligned x slices, no im2col.
    y = jnp.dot(w_ref[0], x, preferred_element_type=jnp.float32)
    for k in range(1, K):
        z = jnp.dot(w_ref[k], x, preferred_element_type=jnp.float32)
        y = y + pltpu.roll(z, shift=Lp - k, axis=1)   # result[:, t] = z[:, t + k]
    return y


def _stats_kernel(x_ref, w_ref, stats_ref, *, valid_len):
    """Pass 1: per-sample BN moments of the conv output (conv never hits HBM)."""
    y = _conv_row(x_ref, w_ref)                              # (C_out, Lp) f32
    c_out, lp = y.shape
    col = jax.lax.broadcasted_iota(jnp.int32, (c_out, lp), 1)
    valid = col < valid_len
    # Pilot-shifted moments: subtract the first valid column before squaring so
    # the variance does not suffer E[y^2] - E[y]^2 catastrophic cancellation.
    pilot = y[:, 0:1]                                        # (C_out, 1)
    d = jnp.where(valid, y - pilot, 0.0)
    s1 = jnp.sum(d, axis=1, keepdims=True)                   # (C_out, 1)
    s2 = jnp.sum(d * d, axis=1, keepdims=True)               # (C_out, 1)
    inv_n = 1.0 / valid_len
    mean_n = pilot + s1 * inv_n                               # per-sample mean
    m2_n = s2 - s1 * s1 * inv_n                               # per-sample sum((y-mean)^2)
    # Single tiny store per sample (vs 2 masked micro-stores per tile before).
    stats_ref[0] = jnp.concatenate([mean_n, m2_n], axis=1)    # (C_out, 2)


def _conv_bn_relu_kernel(x_ref, w_ref, scale_ref, shift_ref, o_ref):
    """Pass 2: recompute conv, apply folded BN affine + ReLU, one full-row store."""
    y = _conv_row(x_ref, w_ref)                               # (C_out, Lp) f32
    L = o_ref.shape[-1]
    out = jnp.maximum(y[:, :L] * scale_ref[...] + shift_ref[...], 0.0)
    o_ref[0] = out.astype(o_ref.dtype)


def my_conv_forward(x, weight, bias, gamma, beta, *, mxu_dtype=jnp.bfloat16):
    """Forward of myConv (do_batch=1, dov=0) for x: (N, C_in, L) float32.

    mxu_dtype: dtype of the MXU operands. bf16 (default, per perf review) uses
    the native MXU path on v6e/v7x and halves x bytes in HBM/VMEM; accumulation
    stays f32 and BatchNorm re-normalizes per channel. Pass jnp.float32 for a
    full-precision conv.
    """
    del bias  # Exact on the training-BN path: the conv bias cancels in y - mean(y).

    N, C_in, L = x.shape
    C_out, _, K = weight.shape
    assert K % 2 == 1, "only odd filter_size gives 'same' length in this module"
    pad = (K - 1) // 2

    # Lane-dense padded length: `pad` zeros of left halo, zeros up to a multiple
    # of 128 on the right (>= pad of them, so every roll wraparound lands on a
    # zero / discarded column). Pad + bf16 cast fuse into one cheap XLA op.
    Lp = _round_up(L + 2 * pad, 128)
    x_p = jnp.pad(x.astype(mxu_dtype), ((0, 0), (0, 0), (pad, Lp - L - pad)))
    w_taps = jnp.transpose(weight, (2, 0, 1)).astype(mxu_dtype)  # (K, C_out, C_in)

    # Generation-aware scoped-VMEM budget: double-buffered blocks plus a few
    # (C_out, Lp) f32 temporaries for the conv row; no hard 32 MiB clamp.
    esize = jnp.dtype(mxu_dtype).itemsize
    per_step = (2 * (C_in * Lp * esize + K * C_out * C_in * esize
                     + C_out * max(L, 2) * 4 + 2 * C_out * 4)
                + 8 * C_out * Lp * 4)
    vmem_limit = int(min(max(per_step + (8 << 20), 32 << 20),
                         (_vmem_cap_bytes() * 3) // 4))
    cparams = pltpu.CompilerParams(dimension_semantics=("parallel",),
                                   vmem_limit_bytes=vmem_limit)

    # ---- Pass 1: per-sample BN moments only (no conv tensor written) -------
    stats = pl.pallas_call(
        functools.partial(_stats_kernel, valid_len=L),
        grid=(N,),
        in_specs=(
            pl.BlockSpec((1, C_in, Lp), lambda n: (n, 0, 0)),
            pl.BlockSpec((K, C_out, C_in), lambda n: (0, 0, 0)),
        ),
        out_specs=pl.BlockSpec((1, C_out, 2), lambda n: (n, 0, 0)),
        out_shape=jax.ShapeDtypeStruct((N, C_out, 2), jnp.float32),
        compiler_params=cparams,
    )(x_p, w_taps)

    # ---- Tiny Chan-style combine across samples (O(N*C_out) glue) ----------
    mean_n, m2_n = stats[..., 0], stats[..., 1]               # (N, C_out) each
    mean = jnp.mean(mean_n, axis=0)                           # (C_out,)
    ss = jnp.sum(m2_n, axis=0) + L * jnp.sum((mean_n - mean) ** 2, axis=0)
    var = jnp.maximum(ss / (N * L), 0.0)                      # biased (PyTorch training BN)
    inv_std = jax.lax.rsqrt(var + BN_EPS)
    scale = (gamma * inv_std).reshape(C_out, 1).astype(jnp.float32)
    shift = (beta - mean * gamma * inv_std).reshape(C_out, 1).astype(jnp.float32)

    # ---- Pass 2: recompute conv, folded BN affine + ReLU, full-row store ---
    out = pl.pallas_call(
        _conv_bn_relu_kernel,
        grid=(N,),
        in_specs=(
            pl.BlockSpec((1, C_in, Lp), lambda n: (n, 0, 0)),
            pl.BlockSpec((K, C_out, C_in), lambda n: (0, 0, 0)),
            pl.BlockSpec((C_out, 1), lambda n: (0, 0)),
            pl.BlockSpec((C_out, 1), lambda n: (0, 0)),
        ),
        out_specs=pl.BlockSpec((1, C_out, L), lambda n: (n, 0, 0)),
        out_shape=jax.ShapeDtypeStruct((N, C_out, L), jnp.float32),
        compiler_params=cparams,
    )(x_p, w_taps, scale, shift)
    return out


def _reference(x, weight, bias, gamma, beta, conv_dtype=jnp.float32):
    """Pure-JAX reference of the PyTorch forward (training-mode BN).

    conv_dtype lets the reference mirror the kernel's MXU-operand precision
    (bf16-round the conv operands, accumulate in f32).
    """
    K = weight.shape[2]
    pad = (K - 1) // 2
    xc = x.astype(conv_dtype).astype(jnp.float32)
    wc = weight.astype(conv_dtype).astype(jnp.float32)
    y = jax.lax.conv_general_dilated(
        xc, wc, window_strides=(1,), padding=[(pad, pad)],
        dimension_numbers=("NCH", "OIH", "NCH"),
        precision=jax.lax.Precision.HIGHEST)
    y = y + bias[None, :, None]
    mean = jnp.mean(y, axis=(0, 2), keepdims=True)
    var = jnp.mean((y - mean) ** 2, axis=(0, 2), keepdims=True)
    y = (y - mean) * jax.lax.rsqrt(var + BN_EPS)
    y = y * gamma[None, :, None] + beta[None, :, None]
    return jnp.maximum(y, 0.0)


if __name__ == "__main__":
    N, C_in, C_out, L, K = 2, 4, 8, 16, FILTER_SIZE

    key = jax.random.PRNGKey(0)
    k_x, k_w, k_b = jax.random.split(key, 3)

    x = jax.random.normal(k_x, (N, C_in, L), dtype=jnp.float32)

    # Deterministic parameter init (shapes per nn.Conv1d / nn.BatchNorm1d).
    bound = 1.0 / np.sqrt(C_in * K)
    weight = jax.random.uniform(k_w, (C_out, C_in, K), jnp.float32, -bound, bound)
    bias = jax.random.uniform(k_b, (C_out,), jnp.float32, -bound, bound)
    gamma = jnp.ones((C_out,), jnp.float32)   # BatchNorm1d default weight
    beta = jnp.zeros((C_out,), jnp.float32)   # BatchNorm1d default bias

    fwd = jax.jit(my_conv_forward)
    out = jax.block_until_ready(fwd(x, weight, bias, gamma, beta))

    # Tight check against a reference at matching MXU precision (bf16 operands,
    # f32 accumulation): any residual difference is accumulation-order only.
    ref_matched = _reference(x, weight, bias, gamma, beta, conv_dtype=jnp.bfloat16)
    np.testing.assert_allclose(np.asarray(out), np.asarray(ref_matched),
                               rtol=5e-4, atol=5e-4)

    # Loose end-to-end check against the full-f32 module semantics (the only
    # deviation is the intentional bf16 MXU-operand rounding; BN re-normalizes).
    ref_f32 = _reference(x, weight, bias, gamma, beta, conv_dtype=jnp.float32)
    np.testing.assert_allclose(np.asarray(out), np.asarray(ref_f32),
                               rtol=5e-2, atol=5e-2)

    print("KERNEL_OK")
</pallas_src>

<mosaic_0001>
module attributes {stable_mosaic.version = 11 : i64} {
  func.func @_conv_bn_relu_kernel(%arg0: i32, %arg1: memref<1x4x128xbf16, #tpu.memory_space<vmem>>, %arg2: memref<3x8x4xbf16, #tpu.memory_space<vmem>>, %arg3: memref<8x1xf32, #tpu.memory_space<vmem>>, %arg4: memref<8x1xf32, #tpu.memory_space<vmem>>, %arg5: memref<1x8x16xf32, #tpu.memory_space<vmem>>) attributes {dimension_semantics = [#tpu.dimension_semantics<parallel>], iteration_bounds = array<i64: 2>, scalar_prefetch = 0 : i64, scratch_operands = 0 : i64, tpu.core_type = #tpu.core_type<tc>, window_params = [{transform_indices = @transform_0, window_bounds = array<i64: 1, 4, 128>}, {pipeline_mode = #tpu.pipeline_mode<synchronous>, transform_indices = @transform_1, window_bounds = array<i64: 3, 8, 4>}, {pipeline_mode = #tpu.pipeline_mode<synchronous>, transform_indices = @transform_2, window_bounds = array<i64: 8, 1>}, {pipeline_mode = #tpu.pipeline_mode<synchronous>, transform_indices = @transform_3, window_bounds = array<i64: 8, 1>}, {transform_indices = @transform_4, window_bounds = array<i64: 1, 8, 16>}]} {
    %c0 = arith.constant 0 : index
    %c0_0 = arith.constant 0 : index
    %c0_1 = arith.constant 0 : index
    %0 = vector.load %arg1[%c0, %c0_0, %c0_1] : memref<1x4x128xbf16, #tpu.memory_space<vmem>>, vector<1x4x128xbf16>
    %1 = vector.shape_cast %0 : vector<1x4x128xbf16> to vector<4x128xbf16>
    %c0_2 = arith.constant 0 : index
    %c0_3 = arith.constant 0 : index
    %c0_4 = arith.constant 0 : index
    %2 = vector.load %arg2[%c0_2, %c0_3, %c0_4] : memref<3x8x4xbf16, #tpu.memory_space<vmem>>, vector<1x8x4xbf16>
    %3 = vector.shape_cast %2 : vector<1x8x4xbf16> to vector<8x4xbf16>
    %cst = arith.constant dense<0.000000e+00> : vector<8x128xf32>
    %4 = tpu.matmul %3, %1, %cst {dimension_numbers = #tpu.dot_dimension_numbers<[1], [0], [0], [1], [0, 0, 1, 1], [], []>} : vector<8x4xbf16>, vector<4x128xbf16>, vector<8x128xf32> -> vector<8x128xf32>
    %c1 = arith.constant 1 : index
    %c0_5 = arith.constant 0 : index
    %c0_6 = arith.constant 0 : index
    %5 = vector.load %arg2[%c1, %c0_5, %c0_6] : memref<3x8x4xbf16, #tpu.memory_space<vmem>>, vector<1x8x4xbf16>
    %6 = vector.shape_cast %5 : vector<1x8x4xbf16> to vector<8x4xbf16>
    %cst_7 = arith.constant dense<0.000000e+00> : vector<8x128xf32>
    %7 = tpu.matmul %6, %1, %cst_7 {dimension_numbers = #tpu.dot_dimension_numbers<[1], [0], [0], [1], [0, 0, 1, 1], [], []>} : vector<8x4xbf16>, vector<4x128xbf16>, vector<8x128xf32> -> vector<8x128xf32>
    %c127_i32 = arith.constant 127 : i32
    %8 = tpu.dynamic_rotate %7 by %c127_i32 dim 1 : vector<8x128xf32>, i32 -> vector<8x128xf32>
    %9 = arith.addf %4, %8 : vector<8x128xf32>
    %c2 = arith.constant 2 : index
    %c0_8 = arith.constant 0 : index
    %c0_9 = arith.constant 0 : index
    %10 = vector.load %arg2[%c2, %c0_8, %c0_9] : memref<3x8x4xbf16, #tpu.memory_space<vmem>>, vector<1x8x4xbf16>
    %11 = vector.shape_cast %10 : vector<1x8x4xbf16> to vector<8x4xbf16>
    %cst_10 = arith.constant dense<0.000000e+00> : vector<8x128xf32>
    %12 = tpu.matmul %11, %1, %cst_10 {dimension_numbers = #tpu.dot_dimension_numbers<[1], [0], [0], [1], [0, 0, 1, 1], [], []>} : vector<8x4xbf16>, vector<4x128xbf16>, vector<8x128xf32> -> vector<8x128xf32>
    %c126_i32 = arith.constant 126 : i32
    %13 = tpu.dynamic_rotate %12 by %c126_i32 dim 1 : vector<8x128xf32>, i32 -> vector<8x128xf32>
    %14 = arith.addf %9, %13 : vector<8x128xf32>
    %15 = vector.extract_strided_slice %14 {offsets = [0, 0], sizes = [8, 16], strides = [1, 1]} : vector<8x128xf32> to vector<8x16xf32>
    %c0_11 = arith.constant 0 : index
    %c0_12 = arith.constant 0 : index
    %16 = vector.load %arg3[%c0_11, %c0_12] : memref<8x1xf32, #tpu.memory_space<vmem>>, vector<8x1xf32>
    %17 = vector.broadcast %16 : vector<8x1xf32> to vector<8x16xf32>
    %18 = arith.mulf %15, %17 : vector<8x16xf32>
    %c0_13 = arith.constant 0 : index
    %c0_14 = arith.constant 0 : index
    %19 = vector.load %arg4[%c0_13, %c0_14] : memref<8x1xf32, #tpu.memory_space<vmem>>, vector<8x1xf32>
    %20 = vector.broadcast %19 : vector<8x1xf32> to vector<8x16xf32>
    %21 = arith.addf %18, %20 : vector<8x16xf32>
    %cst_15 = arith.constant 0.000000e+00 : f32
    %22 = vector.broadcast %cst_15 : f32 to vector<8x16xf32>
    %23 = arith.maximumf %21, %22 : vector<8x16xf32>
    %c0_16 = arith.constant 0 : index
    %c0_17 = arith.constant 0 : index
    %c0_18 = arith.constant 0 : index
    %24 = vector.load %arg5[%c0_16, %c0_17, %c0_18] : memref<1x8x16xf32, #tpu.memory_space<vmem>>, vector<1x8x16xf32>
    %25 = vector.shape_cast %24 : vector<1x8x16xf32> to vector<8x16xf32>
    %26 = vector.shape_cast %23 : vector<8x16xf32> to vector<1x8x16xf32>
    tpu.vector_store %arg5[%c0_16, %c0_17, %c0_18], %26 {strides = array<i32>} : memref<1x8x16xf32, #tpu.memory_space<vmem>>, vector<1x8x16xf32>,
    return
  }
  func.func @transform_0(%arg0: i32) -> (i32, i32, i32) {
    %c0_i32 = arith.constant 0 : i32
    %c0_i32_0 = arith.constant 0 : i32
    %c0_i32_1 = arith.constant 0 : i32
    return %arg0, %c0_i32, %c0_i32_0 : i32, i32, i32
  }
  func.func @transform_1(%arg0: i32) -> (i32, i32, i32) {
    %c0_i32 = arith.constant 0 : i32
    %c0_i32_0 = arith.constant 0 : i32
    %c0_i32_1 = arith.constant 0 : i32
    %c0_i32_2 = arith.constant 0 : i32
    return %c0_i32, %c0_i32_0, %c0_i32_1 : i32, i32, i32
  }
  func.func @transform_2(%arg0: i32) -> (i32, i32) {
    %c0_i32 = arith.constant 0 : i32
    %c0_i32_0 = arith.constant 0 : i32
    %c0_i32_1 = arith.constant 0 : i32
    return %c0_i32, %c0_i32_0 : i32, i32
  }
  func.func @transform_3(%arg0: i32) -> (i32, i32) {
    %c0_i32 = arith.constant 0 : i32
    %c0_i32_0 = arith.constant 0 : i32
    %c0_i32_1 = arith.constant 0 : i32
    return %c0_i32, %c0_i32_0 : i32, i32
  }
  func.func @transform_4(%arg0: i32) -> (i32, i32, i32) {
    %c0_i32 = arith.constant 0 : i32
    %c0_i32_0 = arith.constant 0 : i32
    %c0_i32_1 = arith.constant 0 : i32
    return %arg0, %c0_i32, %c0_i32_0 : i32, i32, i32
  }
}

module attributes {stable_mosaic.version = 11 : i64} {
  func.func @_stats_kernel(%arg0: i32, %arg1: memref<1x4x128xbf16, #tpu.memory_space<vmem>>, %arg2: memref<3x8x4xbf16, #tpu.memory_space<vmem>>, %arg3: memref<1x8x2xf32, #tpu.memory_space<vmem>>) attributes {dimension_semantics = [#tpu.dimension_semantics<parallel>], iteration_bounds = array<i64: 2>, scalar_prefetch = 0 : i64, scratch_operands = 0 : i64, tpu.core_type = #tpu.core_type<tc>, window_params = [{transform_indices = @transform_0, window_bounds = array<i64: 1, 4, 128>}, {pipeline_mode = #tpu.pipeline_mode<synchronous>, transform_indices = @transform_1, window_bounds = array<i64: 3, 8, 4>}, {transform_indices = @transform_2, window_bounds = array<i64: 1, 8, 2>}]} {
    %c0 = arith.constant 0 : index
    %c0_0 = arith.constant 0 : index
    %c0_1 = arith.constant 0 : index
    %0 = vector.load %arg1[%c0, %c0_0, %c0_1] : memref<1x4x128xbf16, #tpu.memory_space<vmem>>, vector<1x4x128xbf16>
    %1 = vector.shape_cast %0 : vector<1x4x128xbf16> to vector<4x128xbf16>
    %c0_2 = arith.constant 0 : index
    %c0_3 = arith.constant 0 : index
    %c0_4 = arith.constant 0 : index
    %2 = vector.load %arg2[%c0_2, %c0_3, %c0_4] : memref<3x8x4xbf16, #tpu.memory_space<vmem>>, vector<1x8x4xbf16>
    %3 = vector.shape_cast %2 : vector<1x8x4xbf16> to vector<8x4xbf16>
    %cst = arith.constant dense<0.000000e+00> : vector<8x128xf32>
    %4 = tpu.matmul %3, %1, %cst {dimension_numbers = #tpu.dot_dimension_numbers<[1], [0], [0], [1], [0, 0, 1, 1], [], []>} : vector<8x4xbf16>, vector<4x128xbf16>, vector<8x128xf32> -> vector<8x128xf32>
    %c1 = arith.constant 1 : index
    %c0_5 = arith.constant 0 : index
    %c0_6 = arith.constant 0 : index
    %5 = vector.load %arg2[%c1, %c0_5, %c0_6] : memref<3x8x4xbf16, #tpu.memory_space<vmem>>, vector<1x8x4xbf16>
    %6 = vector.shape_cast %5 : vector<1x8x4xbf16> to vector<8x4xbf16>
    %cst_7 = arith.constant dense<0.000000e+00> : vector<8x128xf32>
    %7 = tpu.matmul %6, %1, %cst_7 {dimension_numbers = #tpu.dot_dimension_numbers<[1], [0], [0], [1], [0, 0, 1, 1], [], []>} : vector<8x4xbf16>, vector<4x128xbf16>, vector<8x128xf32> -> vector<8x128xf32>
    %c127_i32 = arith.constant 127 : i32
    %8 = tpu.dynamic_rotate %7 by %c127_i32 dim 1 : vector<8x128xf32>, i32 -> vector<8x128xf32>
    %9 = arith.addf %4, %8 : vector<8x128xf32>
    %c2 = arith.constant 2 : index
    %c0_8 = arith.constant 0 : index
    %c0_9 = arith.constant 0 : index
    %10 = vector.load %arg2[%c2, %c0_8, %c0_9] : memref<3x8x4xbf16, #tpu.memory_space<vmem>>, vector<1x8x4xbf16>
    %11 = vector.shape_cast %10 : vector<1x8x4xbf16> to vector<8x4xbf16>
    %cst_10 = arith.constant dense<0.000000e+00> : vector<8x128xf32>
    %12 = tpu.matmul %11, %1, %cst_10 {dimension_numbers = #tpu.dot_dimension_numbers<[1], [0], [0], [1], [0, 0, 1, 1], [], []>} : vector<8x4xbf16>, vector<4x128xbf16>, vector<8x128xf32> -> vector<8x128xf32>
    %c126_i32 = arith.constant 126 : i32
    %13 = tpu.dynamic_rotate %12 by %c126_i32 dim 1 : vector<8x128xf32>, i32 -> vector<8x128xf32>
    %14 = arith.addf %9, %13 : vector<8x128xf32>
    %15 = tpu.iota {dimensions = array<i32: 1>} : vector<8x128xi32>
    %c16_i32 = arith.constant 16 : i32
    %16 = vector.broadcast %c16_i32 : i32 to vector<8x128xi32>
    %17 = arith.cmpi slt, %15, %16 : vector<8x128xi32>
    %18 = vector.extract_strided_slice %14 {offsets = [0, 0], sizes = [8, 1], strides = [1, 1]} : vector<8x128xf32> to vector<8x1xf32>
    %19 = vector.broadcast %18 : vector<8x1xf32> to vector<8x128xf32>
    %20 = arith.subf %14, %19 : vector<8x128xf32>
    %cst_11 = arith.constant 0.000000e+00 : f32
    %21 = vector.broadcast %cst_11 : f32 to vector<8x128xf32>
    %22 = arith.select %17, %20, %21 : vector<8x128xi1>, vector<8x128xf32>
    %cst_12 = arith.constant dense<0.000000e+00> : vector<8xf32>
    %23 = vector.multi_reduction <add>, %22, %cst_12 [1] : vector<8x128xf32> to vector<8xf32>
    %24 = vector.shape_cast %23 : vector<8xf32> to vector<8x1xf32>
    %25 = arith.mulf %22, %22 : vector<8x128xf32>
    %cst_13 = arith.constant dense<0.000000e+00> : vector<8xf32>
    %26 = vector.multi_reduction <add>, %25, %cst_13 [1] : vector<8x128xf32> to vector<8xf32>
    %27 = vector.shape_cast %26 : vector<8xf32> to vector<8x1xf32>
    %cst_14 = arith.constant 6.250000e-02 : f32
    %28 = vector.broadcast %cst_14 : f32 to vector<8x1xf32>
    %29 = arith.mulf %24, %28 : vector<8x1xf32>
    %30 = arith.addf %18, %29 : vector<8x1xf32>
    %31 = arith.mulf %24, %24 : vector<8x1xf32>
    %cst_15 = arith.constant 6.250000e-02 : f32
    %32 = vector.broadcast %cst_15 : f32 to vector<8x1xf32>
    %33 = arith.mulf %31, %32 : vector<8x1xf32>
    %34 = arith.subf %27, %33 : vector<8x1xf32>
    %35 = tpu.concatenate %30, %34 in 1 : vector<8x1xf32>, vector<8x1xf32> -> vector<8x2xf32>
    %c0_16 = arith.constant 0 : index
    %c0_17 = arith.constant 0 : index
    %c0_18 = arith.constant 0 : index
    %36 = vector.load %arg3[%c0_16, %c0_17, %c0_18] : memref<1x8x2xf32, #tpu.memory_space<vmem>>, vector<1x8x2xf32>
    %37 = vector.shape_cast %36 : vector<1x8x2xf32> to vector<8x2xf32>
    %38 = vector.shape_cast %35 : vector<8x2xf32> to vector<1x8x2xf32>
    tpu.vector_store %arg3[%c0_16, %c0_17, %c0_18], %38 {strides = array<i32>} : memref<1x8x2xf32, #tpu.memory_space<vmem>>, vector<1x8x2xf32>,
    return
  }
  func.func @transform_0(%arg0: i32) -> (i32, i32, i32) {
    %c0_i32 = arith.constant 0 : i32
    %c0_i32_0 = arith.constant 0 : i32
    %c0_i32_1 = arith.constant 0 : i32
    return %arg0, %c0_i32, %c0_i32_0 : i32, i32, i32
  }
  func.func @transform_1(%arg0: i32) -> (i32, i32, i32) {
    %c0_i32 = arith.constant 0 : i32
    %c0_i32_0 = arith.constant 0 : i32
    %c0_i32_1 = arith.constant 0 : i32
    %c0_i32_2 = arith.constant 0 : i32
    return %c0_i32, %c0_i32_0, %c0_i32_1 : i32, i32, i32
  }
  func.func @transform_2(%arg0: i32) -> (i32, i32, i32) {
    %c0_i32 = arith.constant 0 : i32
    %c0_i32_0 = arith.constant 0 : i32
    %c0_i32_1 = arith.constant 0 : i32
    return %arg0, %c0_i32, %c0_i32_0 : i32, i32, i32
  }
}

</mosaic_0001>

<bundles_post_ra>
// kernel: my_conv_forward.3
= control target key start
LH: loop header
LB: loop body
LE: loop exit
PB: predicated region body
PF: predicated region fallthrough
CT: control target
= control target key end

     0   :  { %9 = vsyncpa [#allocation3], 0  ;;  %s726_s0 = inlined_call_operand.vmem [shape: bf16[2,4,128], index: 0, kind: input, shape index: {}]   ;;  %s727_s1 = inlined_call_operand.vmem [shape: bf16[3,8,4], index: 1, kind: input, shape index: {}]   ;;  %s728_s2 = inlined_call_operand.vmem [shape: f32[8,1], index: 2, kind: input, shape index: {}]   ;;  %s729_s3 = inlined_call_operand.vmem [shape: f32[8,1], index: 3, kind: input, shape index: {}]   ;;  %s730_s4 = inlined_call_operand.hbm [shape: f32[2,8,16], index: 4, kind: output, shape index: {}]  }
   0x1   :  { %11 = vsyncpa [#allocation3 + $0x1], 0  ;;  %s608_s15 = smov 0   ;;  %s610_s16 = smov 0  }
   0x2   :  { %s612_s17 = smov 0   ;;  %s614_s18 = smov 0  }
   0x3 LB: > { %s629_s19 = sadd.s32 4294967295, %s575_s18   ;;  %s429_s20 = sadd.s32 4294967294, %s575_s18   ;;  %s575_s18 = sphi %s614_s18, %s736_s18   ;;  %s571_s17 = sphi %s612_s17, %s735_s17   ;;  %s567_s16 = sphi %s610_s16, %s734_s16   ;;  %s563_s15 = sphi %s608_s15, %s733_s15  }
   0x4   : > { %s633_s21 = sadd.s32 1, %s575_s18   ;;  %s113_s22 = sadd.s32 1, %s571_s17 }
   0x5   : > { %s110_s23 = ssub.s32 %s575_s18, %s633_s21  ;;  %p123_p0 = scmp.ne.s32.totalorder %s571_s17, %s567_s16 }
   0x6   : > { %p111_p1 = scmp.eq.s32.totalorder %s110_s23, 0  ;;  %p124_p2 = scmp.eq.s32.totalorder %s629_s19, 1 }
   0x7   : > { %p129_p3 = scmp.ne.s32.totalorder %s567_s16, %s563_s15  ;;  %p130_p4 = scmp.eq.s32.totalorder %s429_s20, 1 }
   0x8   : > { %s644_s24 = scalar_select %p111_p1, %s571_s17, %s113_s22  }
   0x9   : > { %p646_p5 = por %p124_p2, %p123_p0  ;;  %p650_p6 = por %p130_p4, %p129_p3 }
   0xa   : > { %p432_p7 = scmp.ge.s32.totalorder %s575_s18, 1  ;;  %p164_p8 = scmp.lt.s32.totalorder %s575_s18, 3 }
   0xc   : > { %p165_p9 = pnand %p432_p7, %p164_p8 }
   0xd   : > { %p189_p10 = scmp.lt.s32.totalorder (!%p165_p9), %s629_s19, 1  ;;  %v577_v0 = vmov (!%p165_p9), 0.0   ;;  %vm578_vm0 = vmmov (!%p165_p9), 0   ;;  %v339_v1 = vld [vmem:[%s728_s2] sm:$0xff] (!%p165_p9)  ;;  %v579_v2 = vmov (!%p165_p9), 0   ;;  %vm202_vm1 = vcmask (!%p165_p9), 1041408  }
   0xe   : > { %168 = sbr.rel (%p165_p9) target bundleno = 387 (0x183), region = 36  ;;  %450 = vmatprep.subr.bf16.mxu0 (!%p165_p9), %v577_v0  ;;  %452 = vmatprep.mubr.msk.bf16.mxu0 (!%p165_p9), %vm578_vm0, %v577_v0  ;;  %v346_v4 = vld [vmem:[%s729_s3] sm:$0xff] (!%p165_p9)  ;;  %vm198_vm2 = vcmask (!%p165_p9), 31744   ;;  %v438_v8 = vld [vmem:[%s727_s1 + $0x8] sm:$0xf] (!%p165_p9)  ;;  %s580_s22 = smov (!%p165_p9), 127  }
   0xf   : > { %456 = vmatprep.subr.bf16.mxu1 (!%p165_p9), %v577_v0  ;;  %458 = vmatprep.mubr.msk.bf16.mxu1 (!%p165_p9), %vm578_vm0, %v577_v0  ;;  %v435_v6 = vld [vmem:[%s727_s1 + $0x4] sm:$0xf] (!%p165_p9)  ;;  %v195_v7 = vld [vmem:[%s727_s1] sm:$0xf] (!%p165_p9)  ;;  %s581_s23 = smov (!%p165_p9), 126   ;;  %s441_s29 = sshll.u32 (!%p165_p9), %s629_s19, 7 }
  0x10   : > { %512 = vset.pattern.permute.xlu0 (!%p165_p9), %v579_v2  ;;  %vm354_vm3 = vcmask (!%p165_p9), 130048   ;;  %s684_s8 = scalar_lea.hbm (!%p165_p9), %s730_s4, %s441_s29 }
  0x11   : > { %342 = vperm.xlu0 (!%p165_p9), %512, %v339_v1  }
  0x15   : > { %s190_s27 = scalar_select %p189_p10, %s629_s19, 1  ;;  %349 = vperm.xlu0 %512, %v346_v4  }
  0x16   : > { %s582_s19 = smov [#allocation2]  }
  0x17   : > { %s434_s30 = sshll.u32 %s190_s27, 1  ;;  %s186_s27 = sand.u32 1, %s567_s16  }
  0x18   : > { %s192_s7 = scalar_lea.vmem %s726_s0, %s434_s30  ;;  %s433_s28 = sshll.u32 %s186_s27, 3 }
  0x19   : > { %v194_v3 = vld [vmem:[%s192_s7] sm:$0x3]  ;;  %s188_s30 = scalar_lea.vmem [#allocation2], %s433_s28  ;;  %s357_s9 = scalar_lea.sflag [#allocation3], %s186_s27 }
  0x1a   : > { %v204_v5 = vsel %vm202_vm1, %v194_v3, 0  ;;  %s370_s5 = sshll.u32 %s188_s30, 4  ;;  %s517_s11 = sshll.u32 %s582_s19, 4  ;;  %s686_s5 = int_to_ptr.vmem [resolvable:$true] %s370_s5  ;;  %s518_s11 = int_to_ptr.vmem [resolvable:$false] %s517_s11 }
  0x1b   : > { %451 = vmatpush3.bf16.msra.mxu0 %v204_v5  ;;  %457 = vmatpush3.bf16.msra.mxu1 %v204_v5  ;;  %s513_s10 = scalar_lea.vmem %s686_s5, 128  ;;  %s519_s12 = scalar_lea.vmem %s518_s11, 256 }
  0x1c   : > { %462 = vmatprep.subr.bf16.mxu0 %v577_v0  ;;  %p514_p11 = scmp.ne.s32.totalorder %s686_s5, %s513_s10  ;;  %p520_p0 = scmp.lt.s32.totalorder %s686_s5, %s518_s11 }
  0x1d   : > { %p521_p1 = scmp.lt.s32.totalorder %s519_s12, %s513_s10 }
  0x1e   : > { %453 = vmatmul.mubr.msk.bf16.vlgmr.msra.gmra.mrb[0].mxu0 %vm198_vm2, %v435_v6  ;;  %459 = vmatmul.mubr.msk.bf16.vlgmr.msra.gmra.mrb[0].mxu1 %vm198_vm2, %v195_v7  ;;  %p515_p12 = pnand %p514_p11, %p646_p5 }
  0x1f   : > { %463 = vmatpush3.bf16.msra.mxu0 %v204_v5  ;;  %464 = vmatprep.mubr.msk.bf16.mxu0 %vm578_vm0, %v577_v0  ;;  %p522_p2 = por %p521_p1, %p520_p0 }
  0x20   : > { %p516_p13 = pneg %p515_p12 }
  0x22   : > { %p523_p3 = pnand %p522_p2, %p516_p13 }
  0x26   : > { %465 = vmatmul.mubr.msk.bf16.vlgmr.msra.gmra.mrb[4].mxu0 %vm198_vm2, %v438_v8 }
  0x90   : > { %v343_v22 = vpop.permute.xlu0 %342 }
  0x94   : > { %v350_v27 = vpop.permute.xlu0 %349 }
  0xf1   : > { %v240_v9 = vpop.f32.mrb[0].mxu0  ;;  %v285_v10 = vpop.f32.mrb[0].mxu1 }
  0xf2   : > { %v454_v11 = vpop.f32.mrb[1].mxu0  ;;  %246 = vrot.lane.b32.xlu1 %v240_v9, %s580_s22  ;;  %v460_v12 = vpop.f32.mrb[1].mxu1 }
  0xf3   : > { %v243_v13 = vpop.f32.mrb[2].mxu0  ;;  %v288_v14 = vpop.f32.mrb[2].mxu1 }
  0xf4   : > { %v455_v15 = vpop.f32.mrb[3].mxu0  ;;  %v461_v16 = vpop.f32.mrb[3].mxu1 }
  0xf9   : > { %v330_v17 = vpop.f32.mrb[4].mxu0 }
  0xfa   : > { %336 = vrot.lane.b32.xlu1 %v330_v17, %s581_s23  ;;  %v466_v18 = vpop.f32.mrb[5].mxu0 }
  0xfb   : > { %v333_v19 = vpop.f32.mrb[6].mxu0 }
  0xfc   : > { %v467_v20 = vpop.f32.mrb[7].mxu0 }
 0x164   : > { %v247_v21 = vpop.permute.xlu1 %246 }
 0x165   : > { %v286_v23 = vadd.f32 %v285_v10, %v247_v21 }
 0x16c   : > { %v337_v24 = vpop.permute.xlu1 %336 }
 0x16d   : > { %v338_v25 = vadd.f32 %v337_v24, %v286_v23 }
 0x16f   : > { %v345_v26 = vmul.f32 %v343_v22, %v338_v25 }
 0x171   : > { %v352_v28 = vadd.f32 %v350_v27, %v345_v26 }
 0x173   : > { %v353_v29 = vmax.f32 %v352_v28, 0.0 }
 0x175   : > { %355 = vst.msk [vmem:[%s188_s30] sm:$0xff] %vm354_vm3, %v353_v29 }
 0x176   : > { %526 = shalt.err (!%p523_p3)
}
 0x177   : > { %s527_s13 = scalar_lea.hbm %s684_s8, 128  ;;  %s531_s22 = scalar_lea.hbm %s730_s4, 256 }
 0x178   : > { %p528_p4 = scmp.ne.s32.totalorder %s684_s8, %s527_s13  ;;  %p532_p9 = scmp.lt.u32.totalorder %s684_s8, %s730_s4 }
 0x179   : > { %p533_p10 = scmp.lt.u32.totalorder %s531_s22, %s527_s13  ;;  %p535_p12 = scmp.lt.u32.totalorder %s527_s13, %s684_s8 }
 0x17a   : > { %p529_p7 = pnand %p528_p4, %p646_p5 }
 0x17b   : > { %p534_p11 = por %p533_p10, %p532_p9 }
 0x17c   : > { %p530_p8 = pneg %p529_p7 }
 0x17d   : > { %p536_p13 = por %p535_p12, %p534_p11 }
 0x17f   : > { %p537_p0 = pnand %p536_p13, %p530_p8 }
 0x181   : > { %540 = shalt.err (!%p537_p0)
}
 0x182   : > { %468 = dma.vmem_to_hbm [thread:$0]  (%p646_p5), %s686_s5, 128, %s684_s8, %s357_s9  }
 0x183 PF: > { %p474_p1 = scmp.ge.s32.totalorder %s575_s18, 2  ;;  %s382_s28 = sand.u32 1, %s563_s15  }
 0x184   : > { %s383_s29 = scalar_lea.sflag [#allocation3], %s382_s28 }
 0x185   : > { %p471_p2 = pnand %p474_p1, %p650_p6 }
 0x187   : > { %558 = dma.done.wait (!%p471_p2), %s383_s29, 128  }
 0x188   : > { %560 = vsyncadd (!%p471_p2), %s383_s29, 4294967168  ;;  %p14_p3 = scmp.ge.s32.totalorder %s633_s21, 4   ;;  %s733_s15 = smov %s567_s16 }
 0x189   : > { %s734_s16 = smov %s571_s17  ;;  %s735_s17 = smov %s644_s24 }
 0x18a   : > { %s736_s18 = smov %s633_s21  ;;  %16 = sbr.rel (!%p14_p3) target bundleno = 3 (0x3), region = 73 }
 0x191   :  { %388 = vsyncpa [#allocation3], 1 }
 0x192   :  { %390 = vsyncpa [#allocation3 + $0x1], 1 }

// kernel: my_conv_forward.2
= control target key start
LH: loop header
LB: loop body
LE: loop exit
PB: predicated region body
PF: predicated region fallthrough
CT: control target
= control target key end

     0   :  { %s443_s9 = smov 0   ;;  %s476_s0 = inlined_call_operand.vmem [shape: bf16[2,4,128], index: 0, kind: input, shape index: {}]   ;;  %s477_s1 = inlined_call_operand.vmem [shape: bf16[3,8,4], index: 1, kind: input, shape index: {}]   ;;  %s478_s2 = inlined_call_operand.vmem [shape: f32[2,8,2], index: 2, kind: output, shape index: {}]  }
   0x1 LB: > { %s362_s10 = sadd.s32 4294967295, %s421_s9   ;;  %p366_p0 = scmp.ge.s32.totalorder %s421_s9, 1  ;;  %s421_s9 = sphi %s443_s9, %s12_s9  }
   0x2   : > { %p111_p1 = scmp.lt.s32.totalorder %s421_s9, 3 }
   0x4   : > { %p112_p2 = pnand %p366_p0, %p111_p1 }
   0x5   : > { %p131_p3 = scmp.lt.s32.totalorder (!%p112_p2), %s362_s10, 1  ;;  %v423_v0 = vmov (!%p112_p2), 0.0   ;;  %vm424_vm0 = vmmov (!%p112_p2), 0   ;;  %vm148_vm1 = vcmask (!%p112_p2), 1041408   ;;  %v369_v3 = vld [vmem:[%s477_s1 + $0x4] sm:$0xf] (!%p112_p2)  ;;  %v285_v23 = vlaneseq (!%p112_p2) }
   0x6   : > { %115 = sbr.rel (%p112_p2) target bundleno = 639 (0x27f), region = 28  ;;  %382 = vmatprep.subr.bf16.mxu0 (!%p112_p2), %v423_v0  ;;  %384 = vmatprep.mubr.msk.bf16.mxu0 (!%p112_p2), %vm424_vm0, %v423_v0  ;;  %vm144_vm2 = vcmask (!%p112_p2), 31744   ;;  %v141_v4 = vld [vmem:[%s477_s1] sm:$0xf] (!%p112_p2)  ;;  %v372_v5 = vld [vmem:[%s477_s1 + $0x8] sm:$0xf] (!%p112_p2) }
   0x7   : > { %388 = vmatprep.subr.bf16.mxu1 (!%p112_p2), %v423_v0  ;;  %390 = vmatprep.mubr.msk.bf16.mxu1 (!%p112_p2), %vm424_vm0, %v423_v0  ;;  %v425_v6 = vmov (!%p112_p2), 0   ;;  %s426_s21 = smov (!%p112_p2), 127   ;;  %s427_s22 = smov (!%p112_p2), 126   ;;  %v286_v24 = vand.u32 (!%p112_p2), 127, %v285_v23  ;;  %vm305_vm4 = vcmask (!%p112_p2), 7168   ;;  %vm307_vm5 = vcmask (!%p112_p2), 15360  }
   0x8   : > { %413 = vset.pattern.permute.xlu1 (!%p112_p2), %v425_v6  ;;  %414 = vset.pattern.permute.xlu0 (!%p112_p2), %v425_v6 }
   0x9   : > { %vm287_vm3 = vcmp.lt.s32.totalorder (!%p112_p2), %v286_v24, 16 }
   0xd   : > { %s480_s10 = smov (!%p131_p3, %s362_s10), 1 }
   0xe   : > { %s367_s11 = sshll.u32 %s480_s10, 1  ;;  %s368_s23 = sshll.u32 %s480_s10, 3 }
   0xf   : > { %s134_s14 = scalar_lea.vmem %s476_s0, %s367_s11  ;;  %s138_s26 = scalar_lea.vmem %s478_s2, %s368_s23 }
  0x10   : > { %v140_v1 = vld [vmem:[%s134_s14] sm:$0x3] }
  0x11   : > { %v150_v2 = vsel %vm148_vm1, %v140_v1, 0 }
  0x12   : > { %383 = vmatpush3.bf16.msra.mxu0 %v150_v2  ;;  %389 = vmatpush3.bf16.msra.mxu1 %v150_v2 }
  0x13   : > { %394 = vmatprep.subr.bf16.mxu0 %v423_v0 }
  0x15   : > { %385 = vmatmul.mubr.msk.bf16.vlgmr.msra.gmra.mrb[0].mxu0 %vm144_vm2, %v369_v3  ;;  %391 = vmatmul.mubr.msk.bf16.vlgmr.msra.gmra.mrb[0].mxu1 %vm144_vm2, %v141_v4 }
  0x16   : > { %395 = vmatpush3.bf16.msra.mxu0 %v150_v2  ;;  %396 = vmatprep.mubr.msk.bf16.mxu0 %vm424_vm0, %v423_v0 }
  0x1d   : > { %397 = vmatmul.mubr.msk.bf16.vlgmr.msra.gmra.mrb[4].mxu0 %vm144_vm2, %v372_v5 }
  0xe8   : > { %v186_v7 = vpop.f32.mrb[0].mxu0  ;;  %v231_v8 = vpop.f32.mrb[0].mxu1 }
  0xe9   : > { %v386_v9 = vpop.f32.mrb[1].mxu0  ;;  %192 = vrot.lane.b32.xlu0 %v186_v7, %s426_s21  ;;  %v392_v10 = vpop.f32.mrb[1].mxu1 }
  0xea   : > { %v189_v11 = vpop.f32.mrb[2].mxu0  ;;  %v234_v12 = vpop.f32.mrb[2].mxu1 }
  0xeb   : > { %v387_v13 = vpop.f32.mrb[3].mxu0  ;;  %v393_v14 = vpop.f32.mrb[3].mxu1 }
  0xf0   : > { %v276_v15 = vpop.f32.mrb[4].mxu0 }
  0xf1   : > { %282 = vrot.lane.b32.xlu0 %v276_v15, %s427_s22  ;;  %v398_v16 = vpop.f32.mrb[5].mxu0 }
  0xf2   : > { %v279_v17 = vpop.f32.mrb[6].mxu0 }
  0xf3   : > { %v399_v18 = vpop.f32.mrb[7].mxu0 }
 0x15b   : > { %v193_v19 = vpop.permute.xlu0 %192 }
 0x15c   : > { %v232_v20 = vadd.f32 %v231_v8, %v193_v19 }
 0x163   : > { %v283_v21 = vpop.permute.xlu0 %282 }
 0x164   : > { %v284_v22 = vadd.f32 %v283_v21, %v232_v20 }
 0x166   : > { %290 = vperm.xlu1 %413, %v284_v22  }
 0x1e5   : > { %v291_v25 = vpop.permute.xlu1 %290 }
 0x1e6   : > { %v293_v26 = vsub.f32 %v284_v22, %v291_v25 }
 0x1e8   : > { %v294_v27 = vsel %vm287_vm3, %v293_v26, 0.0 }
 0x1e9   : > { %295 = vadd.xlane.f32.xlu1 %v294_v27  ;;  %v297_v28 = vmul.f32 %v294_v27, %v294_v27 }
 0x1eb   : > { %298 = vadd.xlane.f32.xlu0 %v297_v28 }
 0x276   : > { %v296_v29 = vpop.xlane.xlu1 %295 }
 0x277   : > { %v300_v30 = vmul.f32 0.0625, %v296_v29  ;;  %v302_v31 = vmul.f32 %v296_v29, %v296_v29 }
 0x278   : > { %v299_v33 = vpop.xlane.xlu0 %298 }
 0x279   : > { %v303_v32 = vmul.f32 0.0625, %v302_v31  ;;  %v301_v34 = vadd.f32 %v300_v30, %v284_v22 }
 0x27b   : > { %v304_v35 = vsub.f32 %v299_v33, %v303_v32 }
 0x27d   : > { %v306_v36 = vsel %vm305_vm4, %v301_v34, %v304_v35 }
 0x27e   : > { %308 = vst.msk [vmem:[%s138_s26] sm:$0xff] %vm307_vm5, %v306_v36 }
 0x27f PF: > { %s12_s9 = sadd.s32 1, %s421_s9  }
 0x280   : > { %p9_p4 = scmp.ge.s32.totalorder %s12_s9, 4  }
 0x282   :  { %11 = sbr.rel (!%p9_p4) target bundleno = 1 (0x1), region = 60 }

</bundles_post_ra>
